<compile_context>
chip_gen: v5e
topology: v5e:2x2
jax: 0.10.0
libtpu: 0.0.40
codegen_flags: <defaults>
</compile_context>

<pallas_src>
import math
import functools

import jax
import jax.numpy as jnp
from jax import lax
from jax.experimental import pallas as pl
from jax.experimental.pallas import tpu as pltpu


def _layer_norm(x, gamma, beta, eps=1e-5):
    mu = jnp.mean(x, axis=-1, keepdims=True)
    var = jnp.mean(jnp.square(x - mu), axis=-1, keepdims=True)
    return (x - mu) * lax.rsqrt(var + eps) * gamma + beta


def _encoder_layer_kernel(x_ref, mask_ref,
                          wq_ref, bq_ref, wk_ref, bk_ref, wv_ref, bv_ref,
                          wo_ref, bo_ref, g1_ref, be1_ref,
                          w1_ref, c1_ref, w2_ref, c2_ref,
                          out_ref, *, nhead):
    # x_ref   : [1, S, D]  (one batch element)
    # mask_ref: [1, S, S]  int32, 1 = masked out (PyTorch masked_fill semantics)
    # weights : [D, D]/[D, F]/[F, D], biases & LN params as [1, D]/[1, F]
    S, D = x_ref.shape[1], x_ref.shape[2]
    hd = D // nhead
    inv_sqrt_hd = 1.0 / math.sqrt(hd)

    x = x_ref[0]                     # [S, D]
    mask = mask_ref[0]               # [S, S]

    # ---- multi-head self-attention -------------------------------------
    q = jnp.dot(x, wq_ref[...], preferred_element_type=jnp.float32) + bq_ref[...]
    k = jnp.dot(x, wk_ref[...], preferred_element_type=jnp.float32) + bk_ref[...]
    v = jnp.dot(x, wv_ref[...], preferred_element_type=jnp.float32) + bv_ref[...]

    dn = (((1,), (1,)), ((), ()))    # contract last dims: q @ k^T without transpose
    attn_proj = jnp.zeros((S, D), jnp.float32)
    for h in range(nhead):           # static, unrolled head loop
        lo, hi = h * hd, (h + 1) * hd
        qh, kh, vh = q[:, lo:hi], k[:, lo:hi], v[:, lo:hi]
        s = lax.dot_general(qh, kh, dn,
                            preferred_element_type=jnp.float32) * inv_sqrt_hd
        s = jnp.where(mask != 0, -1e9, s)          # scores.masked_fill_(mask, -1e9)
        s_max = jnp.max(s, axis=-1, keepdims=True)
        p = jnp.exp(s - s_max)
        p = p / jnp.sum(p, axis=-1, keepdims=True)  # softmax over keys
        ctx = jnp.dot(p, vh, preferred_element_type=jnp.float32)   # [S, hd]
        # fused head-concat + output projection:
        #   concat_h(ctx_h) @ W_o == sum_h ctx_h @ W_o[h*hd:(h+1)*hd, :]
        attn_proj = attn_proj + jnp.dot(ctx, wo_ref[lo:hi, :],
                                        preferred_element_type=jnp.float32)
    attn_proj = attn_proj + bo_ref[...]

    # residual + LayerNorm (the PyTorch forward applies norm1 here)
    h1 = _layer_norm(x + attn_proj, g1_ref[...], be1_ref[...])

    # ---- feed-forward block ---------------------------------------------
    f = jnp.dot(h1, w1_ref[...], preferred_element_type=jnp.float32) + c1_ref[...]
    f = jnp.maximum(f, 0.0)                                          # ReLU
    f = jnp.dot(f, w2_ref[...], preferred_element_type=jnp.float32) + c2_ref[...]

    # residual + LayerNorm (the PyTorch forward reuses norm1, not norm2)
    out = _layer_norm(h1 + f, g1_ref[...], be1_ref[...])
    out_ref[0] = out.astype(out_ref.dtype)


def _const_spec(shape):
    zero = (0,) * len(shape)
    return pl.BlockSpec(shape, lambda *_: zero)


def encoder_layer_forward(x, mask, params, *, nhead):
    """x: [B, S, D] f32; mask: [B, S, S] bool (True = masked); params: dict of f32."""
    B, S, D = x.shape
    F = params["w1"].shape[1]
    mask_i32 = mask.astype(jnp.int32)

    kernel = functools.partial(_encoder_layer_kernel, nhead=nhead)
    return pl.pallas_call(
        kernel,
        out_shape=jax.ShapeDtypeStruct((B, S, D), jnp.float32),
        grid_spec=pltpu.PrefetchScalarGridSpec(
            num_scalar_prefetch=0,
            grid=(B,),
            in_specs=[
                pl.BlockSpec((1, S, D), lambda b: (b, 0, 0)),   # x (per-batch block)
                pl.BlockSpec((1, S, S), lambda b: (b, 0, 0)),   # mask (per-batch block)
                _const_spec((D, D)), _const_spec((1, D)),       # w_q, b_q
                _const_spec((D, D)), _const_spec((1, D)),       # w_k, b_k
                _const_spec((D, D)), _const_spec((1, D)),       # w_v, b_v
                _const_spec((D, D)), _const_spec((1, D)),       # w_o, b_o
                _const_spec((1, D)), _const_spec((1, D)),       # norm1 gamma, beta
                _const_spec((D, F)), _const_spec((1, F)),       # ff w1, b1
                _const_spec((F, D)), _const_spec((1, D)),       # ff w2, b2
            ],
            out_specs=pl.BlockSpec((1, S, D), lambda b: (b, 0, 0)),
        ),
        compiler_params=pltpu.CompilerParams(
            dimension_semantics=("parallel",)),    # shard batch across TCs (v7x)
    )(x, mask_i32,
      params["wq"], params["bq"], params["wk"], params["bk"],
      params["wv"], params["bv"], params["wo"], params["bo"],
      params["g1"], params["be1"],
      params["w1"], params["c1"], params["w2"], params["c2"])


def reference_forward(x, mask, params, *, nhead):
    """Pure-JAX replica of the PyTorch EncoderLayer.forward (eval mode)."""
    B, S, D = x.shape
    hd = D // nhead

    def lin(t, w, b):
        return t @ w + b

    def ln(t, g, be, eps=1e-5):
        mu = t.mean(-1, keepdims=True)
        var = ((t - mu) ** 2).mean(-1, keepdims=True)
        return (t - mu) / jnp.sqrt(var + eps) * g + be

    q = lin(x, params["wq"], params["bq"]).reshape(B, S, nhead, hd).transpose(0, 2, 1, 3)
    k = lin(x, params["wk"], params["bk"]).reshape(B, S, nhead, hd).transpose(0, 2, 1, 3)
    v = lin(x, params["wv"], params["bv"]).reshape(B, S, nhead, hd).transpose(0, 2, 1, 3)
    scores = jnp.einsum("bhqd,bhkd->bhqk", q, k) / math.sqrt(hd)
    scores = jnp.where(mask[:, None, :, :], -1e9, scores)
    attn = jax.nn.softmax(scores, axis=-1)
    ctx = jnp.einsum("bhqk,bhkd->bhqd", attn, v).transpose(0, 2, 1, 3).reshape(B, S, D)
    sa = lin(ctx, params["wo"], params["bo"])
    h1 = ln(x + sa, params["g1"], params["be1"])
    ff = jnp.maximum(lin(h1, params["w1"], params["c1"]), 0.0)
    ff = lin(ff, params["w2"], params["c2"])
    return ln(h1 + ff, params["g1"], params["be1"])


if __name__ == "__main__":
    B, S, D, H, FF = 2, 8, 32, 4, 64

    key = jax.random.PRNGKey(0)
    keys = jax.random.split(key, 16)

    def rnd(k, shape, scale=0.1):
        return scale * jax.random.normal(k, shape, jnp.float32)

    x = jax.random.normal(keys[0], (B, S, D), dtype=jnp.float32)

    # Padding-style attention mask: True where the key position is padding.
    lengths = jnp.array([S, S - 2])
    key_pos = jnp.arange(S)
    mask = jnp.broadcast_to(key_pos[None, None, :] >= lengths[:, None, None], (B, S, S))

    params = dict(
        wq=rnd(keys[1], (D, D)), bq=rnd(keys[2], (1, D)),
        wk=rnd(keys[3], (D, D)), bk=rnd(keys[4], (1, D)),
        wv=rnd(keys[5], (D, D)), bv=rnd(keys[6], (1, D)),
        wo=rnd(keys[7], (D, D)), bo=rnd(keys[8], (1, D)),
        g1=1.0 + rnd(keys[9], (1, D)), be1=rnd(keys[10], (1, D)),
        w1=rnd(keys[11], (D, FF)), c1=rnd(keys[12], (1, FF)),
        w2=rnd(keys[13], (FF, D)), c2=rnd(keys[14], (1, D)),
    )

    out = encoder_layer_forward(x, mask, params, nhead=H)
    out = jax.block_until_ready(out)

    ref = reference_forward(x, mask, params, nhead=H)
    assert out.shape == (B, S, D)
    assert jnp.allclose(out, ref, atol=1e-4, rtol=1e-4), "mismatch vs reference"

    print("KERNEL_OK")
</pallas_src>

<mosaic_0001>
module attributes {stable_mosaic.version = 11 : i64} {
  func.func @_encoder_layer_kernel(%arg0: i32, %arg1: memref<1x8x32xf32, #tpu.memory_space<vmem>>, %arg2: memref<1x8x8xi32, #tpu.memory_space<vmem>>, %arg3: memref<32x32xf32, #tpu.memory_space<vmem>>, %arg4: memref<1x32xf32, #tpu.memory_space<vmem>>, %arg5: memref<32x32xf32, #tpu.memory_space<vmem>>, %arg6: memref<1x32xf32, #tpu.memory_space<vmem>>, %arg7: memref<32x32xf32, #tpu.memory_space<vmem>>, %arg8: memref<1x32xf32, #tpu.memory_space<vmem>>, %arg9: memref<32x32xf32, #tpu.memory_space<vmem>>, %arg10: memref<1x32xf32, #tpu.memory_space<vmem>>, %arg11: memref<1x32xf32, #tpu.memory_space<vmem>>, %arg12: memref<1x32xf32, #tpu.memory_space<vmem>>, %arg13: memref<32x64xf32, #tpu.memory_space<vmem>>, %arg14: memref<1x64xf32, #tpu.memory_space<vmem>>, %arg15: memref<64x32xf32, #tpu.memory_space<vmem>>, %arg16: memref<1x32xf32, #tpu.memory_space<vmem>>, %arg17: memref<1x8x32xf32, #tpu.memory_space<vmem>>) attributes {dimension_semantics = [#tpu.dimension_semantics<parallel>], iteration_bounds = array<i64: 2>, scalar_prefetch = 0 : i64, scratch_operands = 0 : i64, tpu.core_type = #tpu.core_type<tc>, window_params = [{transform_indices = @transform_0, window_bounds = array<i64: 1, 8, 32>}, {transform_indices = @transform_1, window_bounds = array<i64: 1, 8, 8>}, {pipeline_mode = #tpu.pipeline_mode<synchronous>, transform_indices = @transform_2, window_bounds = array<i64: 32, 32>}, {pipeline_mode = #tpu.pipeline_mode<synchronous>, transform_indices = @transform_3, window_bounds = array<i64: 1, 32>}, {pipeline_mode = #tpu.pipeline_mode<synchronous>, transform_indices = @transform_4, window_bounds = array<i64: 32, 32>}, {pipeline_mode = #tpu.pipeline_mode<synchronous>, transform_indices = @transform_5, window_bounds = array<i64: 1, 32>}, {pipeline_mode = #tpu.pipeline_mode<synchronous>, transform_indices = @transform_6, window_bounds = array<i64: 32, 32>}, {pipeline_mode = #tpu.pipeline_mode<synchronous>, transform_indices = @transform_7, window_bounds = array<i64: 1, 32>}, {pipeline_mode = #tpu.pipeline_mode<synchronous>, transform_indices = @transform_8, window_bounds = array<i64: 32, 32>}, {pipeline_mode = #tpu.pipeline_mode<synchronous>, transform_indices = @transform_9, window_bounds = array<i64: 1, 32>}, {pipeline_mode = #tpu.pipeline_mode<synchronous>, transform_indices = @transform_10, window_bounds = array<i64: 1, 32>}, {pipeline_mode = #tpu.pipeline_mode<synchronous>, transform_indices = @transform_11, window_bounds = array<i64: 1, 32>}, {pipeline_mode = #tpu.pipeline_mode<synchronous>, transform_indices = @transform_12, window_bounds = array<i64: 32, 64>}, {pipeline_mode = #tpu.pipeline_mode<synchronous>, transform_indices = @transform_13, window_bounds = array<i64: 1, 64>}, {pipeline_mode = #tpu.pipeline_mode<synchronous>, transform_indices = @transform_14, window_bounds = array<i64: 64, 32>}, {pipeline_mode = #tpu.pipeline_mode<synchronous>, transform_indices = @transform_15, window_bounds = array<i64: 1, 32>}, {transform_indices = @transform_16, window_bounds = array<i64: 1, 8, 32>}]} {
    %c0 = arith.constant 0 : index
    %c0_0 = arith.constant 0 : index
    %c0_1 = arith.constant 0 : index
    %0 = vector.load %arg1[%c0, %c0_0, %c0_1] : memref<1x8x32xf32, #tpu.memory_space<vmem>>, vector<1x8x32xf32>
    %1 = vector.shape_cast %0 : vector<1x8x32xf32> to vector<8x32xf32>
    %c0_2 = arith.constant 0 : index
    %c0_3 = arith.constant 0 : index
    %c0_4 = arith.constant 0 : index
    %2 = vector.load %arg2[%c0_2, %c0_3, %c0_4] : memref<1x8x8xi32, #tpu.memory_space<vmem>>, vector<1x8x8xi32>
    %3 = vector.shape_cast %2 : vector<1x8x8xi32> to vector<8x8xi32>
    %c0_5 = arith.constant 0 : index
    %c0_6 = arith.constant 0 : index
    %4 = vector.load %arg3[%c0_5, %c0_6] : memref<32x32xf32, #tpu.memory_space<vmem>>, vector<32x32xf32>
    %cst = arith.constant dense<0.000000e+00> : vector<8x32xf32>
    %5 = tpu.matmul %1, %4, %cst {dimension_numbers = #tpu.dot_dimension_numbers<[1], [0], [0], [1], [0, 0, 1, 1], [], []>} : vector<8x32xf32>, vector<32x32xf32>, vector<8x32xf32> -> vector<8x32xf32>
    %c0_7 = arith.constant 0 : index
    %c0_8 = arith.constant 0 : index
    %6 = vector.load %arg4[%c0_7, %c0_8] : memref<1x32xf32, #tpu.memory_space<vmem>>, vector<1x32xf32>
    %7 = vector.broadcast %6 : vector<1x32xf32> to vector<8x32xf32>
    %8 = arith.addf %5, %7 : vector<8x32xf32>
    %c0_9 = arith.constant 0 : index
    %c0_10 = arith.constant 0 : index
    %9 = vector.load %arg5[%c0_9, %c0_10] : memref<32x32xf32, #tpu.memory_space<vmem>>, vector<32x32xf32>
    %cst_11 = arith.constant dense<0.000000e+00> : vector<8x32xf32>
    %10 = tpu.matmul %1, %9, %cst_11 {dimension_numbers = #tpu.dot_dimension_numbers<[1], [0], [0], [1], [0, 0, 1, 1], [], []>} : vector<8x32xf32>, vector<32x32xf32>, vector<8x32xf32> -> vector<8x32xf32>
    %c0_12 = arith.constant 0 : index
    %c0_13 = arith.constant 0 : index
    %11 = vector.load %arg6[%c0_12, %c0_13] : memref<1x32xf32, #tpu.memory_space<vmem>>, vector<1x32xf32>
    %12 = vector.broadcast %11 : vector<1x32xf32> to vector<8x32xf32>
    %13 = arith.addf %10, %12 : vector<8x32xf32>
    %c0_14 = arith.constant 0 : index
    %c0_15 = arith.constant 0 : index
    %14 = vector.load %arg7[%c0_14, %c0_15] : memref<32x32xf32, #tpu.memory_space<vmem>>, vector<32x32xf32>
    %cst_16 = arith.constant dense<0.000000e+00> : vector<8x32xf32>
    %15 = tpu.matmul %1, %14, %cst_16 {dimension_numbers = #tpu.dot_dimension_numbers<[1], [0], [0], [1], [0, 0, 1, 1], [], []>} : vector<8x32xf32>, vector<32x32xf32>, vector<8x32xf32> -> vector<8x32xf32>
    %c0_17 = arith.constant 0 : index
    %c0_18 = arith.constant 0 : index
    %16 = vector.load %arg8[%c0_17, %c0_18] : memref<1x32xf32, #tpu.memory_space<vmem>>, vector<1x32xf32>
    %17 = vector.broadcast %16 : vector<1x32xf32> to vector<8x32xf32>
    %18 = arith.addf %15, %17 : vector<8x32xf32>
    %cst_19 = arith.constant 0.000000e+00 : f32
    %19 = vector.broadcast %cst_19 : f32 to vector<8x32xf32>
    %20 = vector.extract_strided_slice %8 {offsets = [0, 0], sizes = [8, 8], strides = [1, 1]} : vector<8x32xf32> to vector<8x8xf32>
    %21 = vector.extract_strided_slice %13 {offsets = [0, 0], sizes = [8, 8], strides = [1, 1]} : vector<8x32xf32> to vector<8x8xf32>
    %22 = vector.extract_strided_slice %18 {offsets = [0, 0], sizes = [8, 8], strides = [1, 1]} : vector<8x32xf32> to vector<8x8xf32>
    %cst_20 = arith.constant dense<0.000000e+00> : vector<8x8xf32>
    %23 = tpu.matmul %20, %21, %cst_20 {dimension_numbers = #tpu.dot_dimension_numbers<[1], [1], [0], [0], [0, 0, 1, 0], [], []>} : vector<8x8xf32>, vector<8x8xf32>, vector<8x8xf32> -> vector<8x8xf32>
    %cst_21 = arith.constant 0.353553385 : f32
    %24 = vector.broadcast %cst_21 : f32 to vector<8x8xf32>
    %25 = arith.mulf %23, %24 : vector<8x8xf32>
    %c0_i32 = arith.constant 0 : i32
    %26 = vector.broadcast %c0_i32 : i32 to vector<8x8xi32>
    %27 = arith.cmpi ne, %3, %26 : vector<8x8xi32>
    %cst_22 = arith.constant -1.000000e+09 : f32
    %28 = vector.broadcast %cst_22 : f32 to vector<8x8xf32>
    %29 = arith.select %27, %28, %25 : vector<8x8xi1>, vector<8x8xf32>
    %cst_23 = arith.constant dense<0xFF800000> : vector<8xf32>
    %30 = vector.multi_reduction <maximumf>, %29, %cst_23 [1] : vector<8x8xf32> to vector<8xf32>
    %31 = vector.shape_cast %30 : vector<8xf32> to vector<8x1xf32>
    %32 = vector.broadcast %31 : vector<8x1xf32> to vector<8x8xf32>
    %33 = arith.subf %29, %32 : vector<8x8xf32>
    %34 = math.exp %33 : vector<8x8xf32>
    %cst_24 = arith.constant dense<0.000000e+00> : vector<8xf32>
    %35 = vector.multi_reduction <add>, %34, %cst_24 [1] : vector<8x8xf32> to vector<8xf32>
    %36 = vector.shape_cast %35 : vector<8xf32> to vector<8x1xf32>
    %37 = vector.broadcast %36 : vector<8x1xf32> to vector<8x8xf32>
    %38 = arith.divf %34, %37 : vector<8x8xf32>
    %cst_25 = arith.constant dense<0.000000e+00> : vector<8x8xf32>
    %39 = tpu.matmul %38, %22, %cst_25 {dimension_numbers = #tpu.dot_dimension_numbers<[1], [0], [0], [1], [0, 0, 1, 1], [], []>} : vector<8x8xf32>, vector<8x8xf32>, vector<8x8xf32> -> vector<8x8xf32>
    %c0_26 = arith.constant 0 : index
    %c0_27 = arith.constant 0 : index
    %40 = vector.load %arg9[%c0_26, %c0_27] : memref<32x32xf32, #tpu.memory_space<vmem>>, vector<8x32xf32>
    %cst_28 = arith.constant dense<0.000000e+00> : vector<8x32xf32>
    %41 = tpu.matmul %39, %40, %cst_28 {dimension_numbers = #tpu.dot_dimension_numbers<[1], [0], [0], [1], [0, 0, 1, 1], [], []>} : vector<8x8xf32>, vector<8x32xf32>, vector<8x32xf32> -> vector<8x32xf32>
    %42 = arith.addf %19, %41 : vector<8x32xf32>
    %43 = vector.extract_strided_slice %8 {offsets = [0, 8], sizes = [8, 8], strides = [1, 1]} : vector<8x32xf32> to vector<8x8xf32>
    %44 = vector.extract_strided_slice %13 {offsets = [0, 8], sizes = [8, 8], strides = [1, 1]} : vector<8x32xf32> to vector<8x8xf32>
    %45 = vector.extract_strided_slice %18 {offsets = [0, 8], sizes = [8, 8], strides = [1, 1]} : vector<8x32xf32> to vector<8x8xf32>
    %cst_29 = arith.constant dense<0.000000e+00> : vector<8x8xf32>
    %46 = tpu.matmul %43, %44, %cst_29 {dimension_numbers = #tpu.dot_dimension_numbers<[1], [1], [0], [0], [0, 0, 1, 0], [], []>} : vector<8x8xf32>, vector<8x8xf32>, vector<8x8xf32> -> vector<8x8xf32>
    %cst_30 = arith.constant 0.353553385 : f32
    %47 = vector.broadcast %cst_30 : f32 to vector<8x8xf32>
    %48 = arith.mulf %46, %47 : vector<8x8xf32>
    %c0_i32_31 = arith.constant 0 : i32
    %49 = vector.broadcast %c0_i32_31 : i32 to vector<8x8xi32>
    %50 = arith.cmpi ne, %3, %49 : vector<8x8xi32>
    %cst_32 = arith.constant -1.000000e+09 : f32
    %51 = vector.broadcast %cst_32 : f32 to vector<8x8xf32>
    %52 = arith.select %50, %51, %48 : vector<8x8xi1>, vector<8x8xf32>
    %cst_33 = arith.constant dense<0xFF800000> : vector<8xf32>
    %53 = vector.multi_reduction <maximumf>, %52, %cst_33 [1] : vector<8x8xf32> to vector<8xf32>
    %54 = vector.shape_cast %53 : vector<8xf32> to vector<8x1xf32>
    %55 = vector.broadcast %54 : vector<8x1xf32> to vector<8x8xf32>
    %56 = arith.subf %52, %55 : vector<8x8xf32>
    %57 = math.exp %56 : vector<8x8xf32>
    %cst_34 = arith.constant dense<0.000000e+00> : vector<8xf32>
    %58 = vector.multi_reduction <add>, %57, %cst_34 [1] : vector<8x8xf32> to vector<8xf32>
    %59 = vector.shape_cast %58 : vector<8xf32> to vector<8x1xf32>
    %60 = vector.broadcast %59 : vector<8x1xf32> to vector<8x8xf32>
    %61 = arith.divf %57, %60 : vector<8x8xf32>
    %cst_35 = arith.constant dense<0.000000e+00> : vector<8x8xf32>
    %62 = tpu.matmul %61, %45, %cst_35 {dimension_numbers = #tpu.dot_dimension_numbers<[1], [0], [0], [1], [0, 0, 1, 1], [], []>} : vector<8x8xf32>, vector<8x8xf32>, vector<8x8xf32> -> vector<8x8xf32>
    %c8 = arith.constant 8 : index
    %c0_36 = arith.constant 0 : index
    %63 = vector.load %arg9[%c8, %c0_36] : memref<32x32xf32, #tpu.memory_space<vmem>>, vector<8x32xf32>
    %cst_37 = arith.constant dense<0.000000e+00> : vector<8x32xf32>
    %64 = tpu.matmul %62, %63, %cst_37 {dimension_numbers = #tpu.dot_dimension_numbers<[1], [0], [0], [1], [0, 0, 1, 1], [], []>} : vector<8x8xf32>, vector<8x32xf32>, vector<8x32xf32> -> vector<8x32xf32>
    %65 = arith.addf %42, %64 : vector<8x32xf32>
    %66 = vector.extract_strided_slice %8 {offsets = [0, 16], sizes = [8, 8], strides = [1, 1]} : vector<8x32xf32> to vector<8x8xf32>
    %67 = vector.extract_strided_slice %13 {offsets = [0, 16], sizes = [8, 8], strides = [1, 1]} : vector<8x32xf32> to vector<8x8xf32>
    %68 = vector.extract_strided_slice %18 {offsets = [0, 16], sizes = [8, 8], strides = [1, 1]} : vector<8x32xf32> to vector<8x8xf32>
    %cst_38 = arith.constant dense<0.000000e+00> : vector<8x8xf32>
    %69 = tpu.matmul %66, %67, %cst_38 {dimension_numbers = #tpu.dot_dimension_numbers<[1], [1], [0], [0], [0, 0, 1, 0], [], []>} : vector<8x8xf32>, vector<8x8xf32>, vector<8x8xf32> -> vector<8x8xf32>
    %cst_39 = arith.constant 0.353553385 : f32
    %70 = vector.broadcast %cst_39 : f32 to vector<8x8xf32>
    %71 = arith.mulf %69, %70 : vector<8x8xf32>
    %c0_i32_40 = arith.constant 0 : i32
    %72 = vector.broadcast %c0_i32_40 : i32 to vector<8x8xi32>
    %73 = arith.cmpi ne, %3, %72 : vector<8x8xi32>
    %cst_41 = arith.constant -1.000000e+09 : f32
    %74 = vector.broadcast %cst_41 : f32 to vector<8x8xf32>
    %75 = arith.select %73, %74, %71 : vector<8x8xi1>, vector<8x8xf32>
    %cst_42 = arith.constant dense<0xFF800000> : vector<8xf32>
    %76 = vector.multi_reduction <maximumf>, %75, %cst_42 [1] : vector<8x8xf32> to vector<8xf32>
    %77 = vector.shape_cast %76 : vector<8xf32> to vector<8x1xf32>
    %78 = vector.broadcast %77 : vector<8x1xf32> to vector<8x8xf32>
    %79 = arith.subf %75, %78 : vector<8x8xf32>
    %80 = math.exp %79 : vector<8x8xf32>
    %cst_43 = arith.constant dense<0.000000e+00> : vector<8xf32>
    %81 = vector.multi_reduction <add>, %80, %cst_43 [1] : vector<8x8xf32> to vector<8xf32>
    %82 = vector.shape_cast %81 : vector<8xf32> to vector<8x1xf32>
    %83 = vector.broadcast %82 : vector<8x1xf32> to vector<8x8xf32>
    %84 = arith.divf %80, %83 : vector<8x8xf32>
    %cst_44 = arith.constant dense<0.000000e+00> : vector<8x8xf32>
    %85 = tpu.matmul %84, %68, %cst_44 {dimension_numbers = #tpu.dot_dimension_numbers<[1], [0], [0], [1], [0, 0, 1, 1], [], []>} : vector<8x8xf32>, vector<8x8xf32>, vector<8x8xf32> -> vector<8x8xf32>
    %c16 = arith.constant 16 : index
    %c0_45 = arith.constant 0 : index
    %86 = vector.load %arg9[%c16, %c0_45] : memref<32x32xf32, #tpu.memory_space<vmem>>, vector<8x32xf32>
    %cst_46 = arith.constant dense<0.000000e+00> : vector<8x32xf32>
    %87 = tpu.matmul %85, %86, %cst_46 {dimension_numbers = #tpu.dot_dimension_numbers<[1], [0], [0], [1], [0, 0, 1, 1], [], []>} : vector<8x8xf32>, vector<8x32xf32>, vector<8x32xf32> -> vector<8x32xf32>
    %88 = arith.addf %65, %87 : vector<8x32xf32>
    %89 = vector.extract_strided_slice %8 {offsets = [0, 24], sizes = [8, 8], strides = [1, 1]} : vector<8x32xf32> to vector<8x8xf32>
    %90 = vector.extract_strided_slice %13 {offsets = [0, 24], sizes = [8, 8], strides = [1, 1]} : vector<8x32xf32> to vector<8x8xf32>
    %91 = vector.extract_strided_slice %18 {offsets = [0, 24], sizes = [8, 8], strides = [1, 1]} : vector<8x32xf32> to vector<8x8xf32>
    %cst_47 = arith.constant dense<0.000000e+00> : vector<8x8xf32>
    %92 = tpu.matmul %89, %90, %cst_47 {dimension_numbers = #tpu.dot_dimension_numbers<[1], [1], [0], [0], [0, 0, 1, 0], [], []>} : vector<8x8xf32>, vector<8x8xf32>, vector<8x8xf32> -> vector<8x8xf32>
    %cst_48 = arith.constant 0.353553385 : f32
    %93 = vector.broadcast %cst_48 : f32 to vector<8x8xf32>
    %94 = arith.mulf %92, %93 : vector<8x8xf32>
    %c0_i32_49 = arith.constant 0 : i32
    %95 = vector.broadcast %c0_i32_49 : i32 to vector<8x8xi32>
    %96 = arith.cmpi ne, %3, %95 : vector<8x8xi32>
    %cst_50 = arith.constant -1.000000e+09 : f32
    %97 = vector.broadcast %cst_50 : f32 to vector<8x8xf32>
    %98 = arith.select %96, %97, %94 : vector<8x8xi1>, vector<8x8xf32>
    %cst_51 = arith.constant dense<0xFF800000> : vector<8xf32>
    %99 = vector.multi_reduction <maximumf>, %98, %cst_51 [1] : vector<8x8xf32> to vector<8xf32>
    %100 = vector.shape_cast %99 : vector<8xf32> to vector<8x1xf32>
    %101 = vector.broadcast %100 : vector<8x1xf32> to vector<8x8xf32>
    %102 = arith.subf %98, %101 : vector<8x8xf32>
    %103 = math.exp %102 : vector<8x8xf32>
    %cst_52 = arith.constant dense<0.000000e+00> : vector<8xf32>
    %104 = vector.multi_reduction <add>, %103, %cst_52 [1] : vector<8x8xf32> to vector<8xf32>
    %105 = vector.shape_cast %104 : vector<8xf32> to vector<8x1xf32>
    %106 = vector.broadcast %105 : vector<8x1xf32> to vector<8x8xf32>
    %107 = arith.divf %103, %106 : vector<8x8xf32>
    %cst_53 = arith.constant dense<0.000000e+00> : vector<8x8xf32>
    %108 = tpu.matmul %107, %91, %cst_53 {dimension_numbers = #tpu.dot_dimension_numbers<[1], [0], [0], [1], [0, 0, 1, 1], [], []>} : vector<8x8xf32>, vector<8x8xf32>, vector<8x8xf32> -> vector<8x8xf32>
    %c24 = arith.constant 24 : index
    %c0_54 = arith.constant 0 : index
    %109 = vector.load %arg9[%c24, %c0_54] : memref<32x32xf32, #tpu.memory_space<vmem>>, vector<8x32xf32>
    %cst_55 = arith.constant dense<0.000000e+00> : vector<8x32xf32>
    %110 = tpu.matmul %108, %109, %cst_55 {dimension_numbers = #tpu.dot_dimension_numbers<[1], [0], [0], [1], [0, 0, 1, 1], [], []>} : vector<8x8xf32>, vector<8x32xf32>, vector<8x32xf32> -> vector<8x32xf32>
    %111 = arith.addf %88, %110 : vector<8x32xf32>
    %c0_56 = arith.constant 0 : index
    %c0_57 = arith.constant 0 : index
    %112 = vector.load %arg10[%c0_56, %c0_57] : memref<1x32xf32, #tpu.memory_space<vmem>>, vector<1x32xf32>
    %113 = vector.broadcast %112 : vector<1x32xf32> to vector<8x32xf32>
    %114 = arith.addf %111, %113 : vector<8x32xf32>
    %115 = arith.addf %1, %114 : vector<8x32xf32>
    %c0_58 = arith.constant 0 : index
    %c0_59 = arith.constant 0 : index
    %116 = vector.load %arg11[%c0_58, %c0_59] : memref<1x32xf32, #tpu.memory_space<vmem>>, vector<1x32xf32>
    %c0_60 = arith.constant 0 : index
    %c0_61 = arith.constant 0 : index
    %117 = vector.load %arg12[%c0_60, %c0_61] : memref<1x32xf32, #tpu.memory_space<vmem>>, vector<1x32xf32>
    %cst_62 = arith.constant dense<0.000000e+00> : vector<8xf32>
    %118 = vector.multi_reduction <add>, %115, %cst_62 [1] : vector<8x32xf32> to vector<8xf32>
    %119 = vector.shape_cast %118 : vector<8xf32> to vector<8x1xf32>
    %cst_63 = arith.constant 3.200000e+01 : f32
    %120 = vector.broadcast %cst_63 : f32 to vector<8x1xf32>
    %121 = arith.divf %119, %120 : vector<8x1xf32>
    %122 = vector.broadcast %121 : vector<8x1xf32> to vector<8x32xf32>
    %123 = arith.subf %115, %122 : vector<8x32xf32>
    %124 = arith.mulf %123, %123 : vector<8x32xf32>
    %cst_64 = arith.constant dense<0.000000e+00> : vector<8xf32>
    %125 = vector.multi_reduction <add>, %124, %cst_64 [1] : vector<8x32xf32> to vector<8xf32>
    %126 = vector.shape_cast %125 : vector<8xf32> to vector<8x1xf32>
    %cst_65 = arith.constant 3.200000e+01 : f32
    %127 = vector.broadcast %cst_65 : f32 to vector<8x1xf32>
    %128 = arith.divf %126, %127 : vector<8x1xf32>
    %129 = vector.broadcast %121 : vector<8x1xf32> to vector<8x32xf32>
    %130 = arith.subf %115, %129 : vector<8x32xf32>
    %cst_66 = arith.constant 9.99999974E-6 : f32
    %131 = vector.broadcast %cst_66 : f32 to vector<8x1xf32>
    %132 = arith.addf %128, %131 : vector<8x1xf32>
    %133 = math.rsqrt %132 : vector<8x1xf32>
    %134 = vector.broadcast %133 : vector<8x1xf32> to vector<8x32xf32>
    %135 = arith.mulf %130, %134 : vector<8x32xf32>
    %136 = vector.broadcast %116 : vector<1x32xf32> to vector<8x32xf32>
    %137 = arith.mulf %135, %136 : vector<8x32xf32>
    %138 = vector.broadcast %117 : vector<1x32xf32> to vector<8x32xf32>
    %139 = arith.addf %137, %138 : vector<8x32xf32>
    %c0_67 = arith.constant 0 : index
    %c0_68 = arith.constant 0 : index
    %140 = vector.load %arg13[%c0_67, %c0_68] : memref<32x64xf32, #tpu.memory_space<vmem>>, vector<32x64xf32>
    %cst_69 = arith.constant dense<0.000000e+00> : vector<8x64xf32>
    %141 = tpu.matmul %139, %140, %cst_69 {dimension_numbers = #tpu.dot_dimension_numbers<[1], [0], [0], [1], [0, 0, 1, 1], [], []>} : vector<8x32xf32>, vector<32x64xf32>, vector<8x64xf32> -> vector<8x64xf32>
    %c0_70 = arith.constant 0 : index
    %c0_71 = arith.constant 0 : index
    %142 = vector.load %arg14[%c0_70, %c0_71] : memref<1x64xf32, #tpu.memory_space<vmem>>, vector<1x64xf32>
    %143 = vector.broadcast %142 : vector<1x64xf32> to vector<8x64xf32>
    %144 = arith.addf %141, %143 : vector<8x64xf32>
    %cst_72 = arith.constant 0.000000e+00 : f32
    %145 = vector.broadcast %cst_72 : f32 to vector<8x64xf32>
    %146 = arith.maximumf %144, %145 : vector<8x64xf32>
    %c0_73 = arith.constant 0 : index
    %c0_74 = arith.constant 0 : index
    %147 = vector.load %arg15[%c0_73, %c0_74] : memref<64x32xf32, #tpu.memory_space<vmem>>, vector<64x32xf32>
    %cst_75 = arith.constant dense<0.000000e+00> : vector<8x32xf32>
    %148 = tpu.matmul %146, %147, %cst_75 {dimension_numbers = #tpu.dot_dimension_numbers<[1], [0], [0], [1], [0, 0, 1, 1], [], []>} : vector<8x64xf32>, vector<64x32xf32>, vector<8x32xf32> -> vector<8x32xf32>
    %c0_76 = arith.constant 0 : index
    %c0_77 = arith.constant 0 : index
    %149 = vector.load %arg16[%c0_76, %c0_77] : memref<1x32xf32, #tpu.memory_space<vmem>>, vector<1x32xf32>
    %150 = vector.broadcast %149 : vector<1x32xf32> to vector<8x32xf32>
    %151 = arith.addf %148, %150 : vector<8x32xf32>
    %152 = arith.addf %139, %151 : vector<8x32xf32>
    %c0_78 = arith.constant 0 : index
    %c0_79 = arith.constant 0 : index
    %153 = vector.load %arg11[%c0_78, %c0_79] : memref<1x32xf32, #tpu.memory_space<vmem>>, vector<1x32xf32>
    %c0_80 = arith.constant 0 : index
    %c0_81 = arith.constant 0 : index
    %154 = vector.load %arg12[%c0_80, %c0_81] : memref<1x32xf32, #tpu.memory_space<vmem>>, vector<1x32xf32>
    %cst_82 = arith.constant dense<0.000000e+00> : vector<8xf32>
    %155 = vector.multi_reduction <add>, %152, %cst_82 [1] : vector<8x32xf32> to vector<8xf32>
    %156 = vector.shape_cast %155 : vector<8xf32> to vector<8x1xf32>
    %cst_83 = arith.constant 3.200000e+01 : f32
    %157 = vector.broadcast %cst_83 : f32 to vector<8x1xf32>
    %158 = arith.divf %156, %157 : vector<8x1xf32>
    %159 = vector.broadcast %158 : vector<8x1xf32> to vector<8x32xf32>
    %160 = arith.subf %152, %159 : vector<8x32xf32>
    %161 = arith.mulf %160, %160 : vector<8x32xf32>
    %cst_84 = arith.constant dense<0.000000e+00> : vector<8xf32>
    %162 = vector.multi_reduction <add>, %161, %cst_84 [1] : vector<8x32xf32> to vector<8xf32>
    %163 = vector.shape_cast %162 : vector<8xf32> to vector<8x1xf32>
    %cst_85 = arith.constant 3.200000e+01 : f32
    %164 = vector.broadcast %cst_85 : f32 to vector<8x1xf32>
    %165 = arith.divf %163, %164 : vector<8x1xf32>
    %166 = vector.broadcast %158 : vector<8x1xf32> to vector<8x32xf32>
    %167 = arith.subf %152, %166 : vector<8x32xf32>
    %cst_86 = arith.constant 9.99999974E-6 : f32
    %168 = vector.broadcast %cst_86 : f32 to vector<8x1xf32>
    %169 = arith.addf %165, %168 : vector<8x1xf32>
    %170 = math.rsqrt %169 : vector<8x1xf32>
    %171 = vector.broadcast %170 : vector<8x1xf32> to vector<8x32xf32>
    %172 = arith.mulf %167, %171 : vector<8x32xf32>
    %173 = vector.broadcast %153 : vector<1x32xf32> to vector<8x32xf32>
    %174 = arith.mulf %172, %173 : vector<8x32xf32>
    %175 = vector.broadcast %154 : vector<1x32xf32> to vector<8x32xf32>
    %176 = arith.addf %174, %175 : vector<8x32xf32>
    %c0_87 = arith.constant 0 : index
    %c0_88 = arith.constant 0 : index
    %c0_89 = arith.constant 0 : index
    %177 = vector.load %arg17[%c0_87, %c0_88, %c0_89] : memref<1x8x32xf32, #tpu.memory_space<vmem>>, vector<1x8x32xf32>
    %178 = vector.shape_cast %177 : vector<1x8x32xf32> to vector<8x32xf32>
    %179 = vector.shape_cast %176 : vector<8x32xf32> to vector<1x8x32xf32>
    tpu.vector_store %arg17[%c0_87, %c0_88, %c0_89], %179 {strides = array<i32>} : memref<1x8x32xf32, #tpu.memory_space<vmem>>, vector<1x8x32xf32>,
    return
  }
  func.func @transform_0(%arg0: i32) -> (i32, i32, i32) {
    %c0_i32 = arith.constant 0 : i32
    %c0_i32_0 = arith.constant 0 : i32
    %c0_i32_1 = arith.constant 0 : i32
    return %arg0, %c0_i32, %c0_i32_0 : i32, i32, i32
  }
  func.func @transform_1(%arg0: i32) -> (i32, i32, i32) {
    %c0_i32 = arith.constant 0 : i32
    %c0_i32_0 = arith.constant 0 : i32
    %c0_i32_1 = arith.constant 0 : i32
    return %arg0, %c0_i32, %c0_i32_0 : i32, i32, i32
  }
  func.func @transform_2(%arg0: i32) -> (i32, i32) {
    %c0_i32 = arith.constant 0 : i32
    %c0_i32_0 = arith.constant 0 : i32
    %c0_i32_1 = arith.constant 0 : i32
    return %c0_i32, %c0_i32_0 : i32, i32
  }
  func.func @transform_3(%arg0: i32) -> (i32, i32) {
    %c0_i32 = arith.constant 0 : i32
    %c0_i32_0 = arith.constant 0 : i32
    %c0_i32_1 = arith.constant 0 : i32
    return %c0_i32, %c0_i32_0 : i32, i32
  }
  func.func @transform_4(%arg0: i32) -> (i32, i32) {
    %c0_i32 = arith.constant 0 : i32
    %c0_i32_0 = arith.constant 0 : i32
    %c0_i32_1 = arith.constant 0 : i32
    return %c0_i32, %c0_i32_0 : i32, i32
  }
  func.func @transform_5(%arg0: i32) -> (i32, i32) {
    %c0_i32 = arith.constant 0 : i32
    %c0_i32_0 = arith.constant 0 : i32
    %c0_i32_1 = arith.constant 0 : i32
    return %c0_i32, %c0_i32_0 : i32, i32
  }
  func.func @transform_6(%arg0: i32) -> (i32, i32) {
    %c0_i32 = arith.constant 0 : i32
    %c0_i32_0 = arith.constant 0 : i32
    %c0_i32_1 = arith.constant 0 : i32
    return %c0_i32, %c0_i32_0 : i32, i32
  }
  func.func @transform_7(%arg0: i32) -> (i32, i32) {
    %c0_i32 = arith.constant 0 : i32
    %c0_i32_0 = arith.constant 0 : i32
    %c0_i32_1 = arith.constant 0 : i32
    return %c0_i32, %c0_i32_0 : i32, i32
  }
  func.func @transform_8(%arg0: i32) -> (i32, i32) {
    %c0_i32 = arith.constant 0 : i32
    %c0_i32_0 = arith.constant 0 : i32
    %c0_i32_1 = arith.constant 0 : i32
    return %c0_i32, %c0_i32_0 : i32, i32
  }
  func.func @transform_9(%arg0: i32) -> (i32, i32) {
    %c0_i32 = arith.constant 0 : i32
    %c0_i32_0 = arith.constant 0 : i32
    %c0_i32_1 = arith.constant 0 : i32
    return %c0_i32, %c0_i32_0 : i32, i32
  }
  func.func @transform_10(%arg0: i32) -> (i32, i32) {
    %c0_i32 = arith.constant 0 : i32
    %c0_i32_0 = arith.constant 0 : i32
    %c0_i32_1 = arith.constant 0 : i32
    return %c0_i32, %c0_i32_0 : i32, i32
  }
  func.func @transform_11(%arg0: i32) -> (i32, i32) {
    %c0_i32 = arith.constant 0 : i32
    %c0_i32_0 = arith.constant 0 : i32
    %c0_i32_1 = arith.constant 0 : i32
    return %c0_i32, %c0_i32_0 : i32, i32
  }
  func.func @transform_12(%arg0: i32) -> (i32, i32) {
    %c0_i32 = arith.constant 0 : i32
    %c0_i32_0 = arith.constant 0 : i32
    %c0_i32_1 = arith.constant 0 : i32
    return %c0_i32, %c0_i32_0 : i32, i32
  }
  func.func @transform_13(%arg0: i32) -> (i32, i32) {
    %c0_i32 = arith.constant 0 : i32
    %c0_i32_0 = arith.constant 0 : i32
    %c0_i32_1 = arith.constant 0 : i32
    return %c0_i32, %c0_i32_0 : i32, i32
  }
  func.func @transform_14(%arg0: i32) -> (i32, i32) {
    %c0_i32 = arith.constant 0 : i32
    %c0_i32_0 = arith.constant 0 : i32
    %c0_i32_1 = arith.constant 0 : i32
    return %c0_i32, %c0_i32_0 : i32, i32
  }
  func.func @transform_15(%arg0: i32) -> (i32, i32) {
    %c0_i32 = arith.constant 0 : i32
    %c0_i32_0 = arith.constant 0 : i32
    %c0_i32_1 = arith.constant 0 : i32
    return %c0_i32, %c0_i32_0 : i32, i32
  }
  func.func @transform_16(%arg0: i32) -> (i32, i32, i32) {
    %c0_i32 = arith.constant 0 : i32
    %c0_i32_0 = arith.constant 0 : i32
    %c0_i32_1 = arith.constant 0 : i32
    return %arg0, %c0_i32, %c0_i32_0 : i32, i32, i32
  }
}

</mosaic_0001>

<bundles_post_ra>
// kernel: tpu_custom_call.1
= control target key start
LH: loop header
LB: loop body
LE: loop exit
PB: predicated region body
PF: predicated region fallthrough
CT: control target
= control target key end

     0   :  { %s2174_s0 = inlined_call_operand.hbm [shape: f32[2,8,32], index: 0, kind: input, shape index: {}]   ;;  %s2175_s1 = inlined_call_operand.hbm [shape: s32[2,8,8], index: 1, kind: input, shape index: {}]   ;;  %s2176_s2 = inlined_call_operand.vmem [shape: f32[32,32], index: 2, kind: input, shape index: {}]   ;;  %s2177_s3 = inlined_call_operand.vmem [shape: f32[1,32], index: 3, kind: input, shape index: {}]   ;;  %s2178_s4 = inlined_call_operand.vmem [shape: f32[32,32], index: 4, kind: input, shape index: {}]   ;;  %s2179_s5 = inlined_call_operand.vmem [shape: f32[1,32], index: 5, kind: input, shape index: {}]   ;;  %s2180_s6 = inlined_call_operand.vmem [shape: f32[32,32], index: 6, kind: input, shape index: {}]   ;;  %s2181_s7 = inlined_call_operand.vmem [shape: f32[1,32], index: 7, kind: input, shape index: {}]   ;;  %s2182_s8 = inlined_call_operand.hbm [shape: f32[32,32], index: 8, kind: input, shape index: {}]   ;;  %s2183_s9 = inlined_call_operand.vmem [shape: f32[1,32], index: 9, kind: input, shape index: {}]   ;;  %s2184_s10 = inlined_call_operand.vmem [shape: f32[1,32], index: 10, kind: input, shape index: {}]   ;;  %s2185_s11 = inlined_call_operand.vmem [shape: f32[1,32], index: 11, kind: input, shape index: {}]   ;;  %s2186_s12 = inlined_call_operand.hbm [shape: f32[32,64], index: 12, kind: input, shape index: {}]   ;;  %s2187_s13 = inlined_call_operand.vmem [shape: f32[1,64], index: 13, kind: input, shape index: {}]   ;;  %s2188_s14 = inlined_call_operand.vmem [shape: f32[64,32], index: 14, kind: input, shape index: {}]   ;;  %s2189_s15 = inlined_call_operand.vmem [shape: f32[1,32], index: 15, kind: input, shape index: {}]   ;;  %s2190_s16 = inlined_call_operand.hbm [shape: f32[2,8,32], index: 16, kind: output, shape index: {}]  }
   0x1   :  { %2202 = sst [smem:[#allocation23_spill]] %s2174_s0 }
   0x2   :  { %2203 = sst [smem:[#allocation24_spill]] %s2182_s8 }
   0x3   :  { %2204 = sst [smem:[#allocation25_spill]] %s2184_s10 }
   0x4   :  { %2205 = sst [smem:[#allocation26_spill]] %s2185_s11 }
   0x5   :  { %2206 = sst [smem:[#allocation27_spill]] %s2186_s12 }
   0x6   :  { %2207 = sst [smem:[#allocation28_spill]] %s2187_s13 }
   0x7   :  { %2208 = sst [smem:[#allocation29_spill]] %s2188_s14 }
   0x8   :  { %2209 = sst [smem:[#allocation30_spill]] %s2189_s15 }
   0x9   :  { %2210 = sst [smem:[#allocation31_spill]] %s2190_s16 }
   0xa   :  { %21 = vsyncpa [#allocation3], 0 }
   0xb   :  { %23 = vsyncpa [#allocation3 + $0x1], 0 }
   0xc   :  { %24 = vsyncpa [#allocation6], 0 }
   0xd   :  { %26 = vsyncpa [#allocation6 + $0x1], 0 }
   0xe   :  { %27 = vsyncpa [#allocation9], 0 }
   0xf   :  { %28 = vsyncpa [#allocation4], 0 }
  0x10   :  { %30 = vsyncpa [#allocation4 + $0x1], 0  ;;  %s1825_s21 = smov 0   ;;  %s1827_s22 = smov 0  }
  0x11   :  { %s1829_s23 = smov 0   ;;  %s1831_s24 = smov 0  }
  0x12 LB: > { %2211 = sst [smem:[#allocation16_spill]] %s1718_s21  ;;  %s1849_s28 = sadd.s32 4294967295, %s1730_s24   ;;  %s1730_s24 = sphi %s1831_s24, %s2239_s24   ;;  %s1726_s23 = sphi %s1829_s23, %s2244_s23   ;;  %s1722_s22 = sphi %s1827_s22, %s2243_s22   ;;  %s1718_s21 = sphi %s1825_s21, %s2242_s21  }
  0x13   : > { %2212 = sst [smem:[#allocation17_spill]] %s1726_s23  ;;  %p1385_p0 = scmp.ge.s32.totalorder %s1730_s24, 1 }
  0x14   : > { %2213 = sst [smem:[#allocation18_spill]] %s1730_s24  ;;  %p57_p1 = scmp.eq.s32.totalorder %s1849_s28, 0 }
  0x15   : > { %s2214_s8 = sld [smem:[#allocation24_spill]]  ;;  %p413_p2 = scmp.lt.s32.totalorder %s1730_s24, 3 }
  0x16   : > { %s1732_s30 = smov [#allocation7]   ;;  %s2216_s12 = sld [smem:[#allocation27_spill]] }
  0x17   : > { %p1854_p3 = pnand %p1385_p0, %p413_p2  ;;  %s444_s0 = sshll.u32 %s1732_s30, 4  ;;  %s445_s0 = int_to_ptr.vmem [resolvable:$true] %s444_s0 }
  0x18   : > { %s1733_s20 = smov [#allocation8]   ;;  %s1734_s26 = smov 128  }
  0x19   : > { %p1438_p4 = pneg %p1854_p3  ;;  %s467_s25 = sshll.u32 %s1733_s20, 4  ;;  %s468_s25 = int_to_ptr.vmem [resolvable:$true] %s467_s25 }
  0x1a   : > { %s1735_s30 = smov 8   ;;  %s1384_s17 = sadd.s32 4294967294, %s1730_s24  }
  0x1b   : > { %s442_s27 = sshll.u32 %s2214_s8, 4  ;;  %p1439_p6 = pnand %p1438_p4, %p57_p1  ;;  %s443_s27 = int_to_ptr.hbm [resolvable:$true] %s442_s27 }
  0x1c   : > { %s465_s19 = sshll.u32 %s2216_s12, 4  ;;  %s1868_s18 = sadd.s32 1, %s1730_s24   ;;  %s466_s19 = int_to_ptr.hbm [resolvable:$true] %s465_s19 }
  0x1d   : > { %1441 = dma.hbm_to_vmem [thread:$0]  (!%p1439_p6), %s443_s27, 512, %s445_s0, [#allocation6], %s1734_s26, %s1734_s26, %s1735_s30  }
  0x1e   : > { %1444 = dma.hbm_to_vmem [thread:$0]  (!%p1439_p6), %s466_s19, 512, %s468_s25, [#allocation9], %s1734_s26, %s1734_s26, %s1735_s30  }
  0x1f   : > { %2217 = sst [smem:[#allocation19_spill]] %s1868_s18  ;;  %s40_s8 = ssub.s32 %s1730_s24, %s1868_s18 }
  0x20   : > { %s43_s12 = sadd.s32 1, %s1726_s23  ;;  %p41_p7 = scmp.eq.s32.totalorder %s40_s8, 0 }
  0x21   : > { %p50_p8 = scmp.ne.s32.totalorder %s1726_s23, %s1722_s22  ;;  %p51_p9 = scmp.eq.s32.totalorder %s1730_s24, 0 }
  0x22   : > { %p56_p10 = scmp.ne.s32.totalorder %s1722_s22, %s1718_s21  ;;  %p400_p13 = scmp.eq.s32.totalorder %s1849_s28, 1 }
  0x23   : > { %s1879_s20 = scalar_select %p41_p7, %s1726_s23, %s43_s12  }
  0x24   : > { %p1881_p11 = por %p51_p9, %p50_p8  ;;  %p1887_p12 = por %p57_p1, %p56_p10 }
  0x25   : > { %2218 = sst [smem:[#allocation20_spill]] %s1879_s20  ;;  %p406_p0 = scmp.eq.s32.totalorder %s1384_s17, 1 }
  0x26   : > { %p1458_p2 = scmp.lt.s32.totalorder %s1730_s24, 2  ;;  %s490_s8 = sand.u32 1, %s1726_s23  }
  0x27   : > { %p1894_p4 = por %p400_p13, %p50_p8  ;;  %p1898_p6 = por %p406_p0, %p56_p10 }
  0x28   : > { %s1902_s19 = sshll.u32 %s490_s8, 3  ;;  %s1390_s25 = sshll.u32 %s1730_s24, 3 }
  0x29   : > { %s2221_s0 = scalar_select %p1894_p4, 1, 0 }
  0x2a   : > { %s2223_s12 = scalar_select %p1898_p6, 1, 0 }
  0x2b   : > { %2222 = sst [smem:[#allocation21_spill]] %s2221_s0  ;;  %s494_s21 = scalar_lea.vmem [#allocation2], %s1902_s19 }
  0x2c   : > { %2224 = sst [smem:[#allocation22_spill]] %s2223_s12  ;;  %s502_s17 = sshll.u32 %s494_s21, 4  ;;  %s503_s17 = int_to_ptr.vmem [resolvable:$true] %s502_s17 }
  0x2d   : > { %s2225_s20 = sld [smem:[#allocation23_spill]]  ;;  %p1911_p7 = pnand %p1458_p2, %p1881_p11 }
  0x2e   : > { %s517_s13 = scalar_lea.hbm %s2175_s1, %s1390_s25  ;;  %s509_s11 = sand.u32 1, %s1730_s24  }
  0x2f   : > { %s491_s10 = scalar_lea.sflag [#allocation3], %s490_s8  ;;  %p1596_p9 = pneg %p1911_p7 }
  0x33   : > { %s498_s18 = scalar_lea.hbm %s2225_s20, %s1390_s25 }
  0x34   : > { %s500_s15 = sshll.u32 %s498_s18, 4  ;;  %s1599_s18 = scalar_lea.hbm %s2225_s20, 16  ;;  %s501_s15 = int_to_ptr.hbm [resolvable:$true] %s500_s15 }
  0x35   : > { %s1592_s26 = sshra.s32 %s501_s15, 4  ;;  %s1593_s26 = int_to_ptr.hbm [resolvable:$true] %s1592_s26 }
  0x36   : > { %s1594_s30 = scalar_lea.hbm %s1593_s26, 8  ;;  %p1600_p13 = scmp.lt.s32.totalorder %s1593_s26, %s2225_s20 }
  0x37   : > { %p1595_p8 = scmp.ne.s32.totalorder %s1593_s26, %s1594_s30  ;;  %p1601_p0 = scmp.lt.s32.totalorder %s1599_s18, %s1594_s30 }
  0x39   : > { %p1597_p10 = pnand %p1596_p9, %p1595_p8  ;;  %p1602_p2 = por %p1601_p0, %p1600_p13 }
  0x3b   : > { %p1598_p11 = pneg %p1597_p10 }
  0x3d   : > { %p1603_p5 = pnand %p1602_p2, %p1598_p11 }
  0x3f   : > { %1606 = shalt.err (!%p1603_p5)
}
  0x40   : > { %1448 = dma.hbm_to_vmem [thread:$0]  (!%p1911_p7), %s501_s15, 128, %s503_s17, %s491_s10  }
  0x41   : > { %s519_s8 = sshll.u32 %s517_s13, 4  ;;  %s513_s25 = scalar_lea.vmem [#allocation5], %s1902_s19  ;;  %s520_s8 = int_to_ptr.hbm [resolvable:$true] %s519_s8 }
  0x42   : > { %s521_s24 = sshll.u32 %s513_s25, 4  ;;  %s510_s16 = scalar_lea.sflag [#allocation6], %s509_s11  ;;  %s522_s24 = int_to_ptr.vmem [resolvable:$true] %s521_s24 }
  0x43   : > { %s1622_s21 = sshra.s32 %s520_s8, 4  ;;  %s1629_s18 = scalar_lea.hbm %s2175_s1, 16  ;;  %s1623_s21 = int_to_ptr.hbm [resolvable:$true] %s1622_s21 }
  0x44   : > { %s1624_s14 = scalar_lea.hbm %s1623_s21, 8  ;;  %p1630_p5 = scmp.lt.s32.totalorder %s1623_s21, %s2175_s1 }
  0x45   : > { %p1625_p8 = scmp.ne.s32.totalorder %s1623_s21, %s1624_s14  ;;  %p1631_p13 = scmp.lt.s32.totalorder %s1629_s18, %s1624_s14 }
  0x47   : > { %p1627_p10 = pnand %p1625_p8, %p1596_p9  ;;  %p1632_p0 = por %p1631_p13, %p1630_p5 }
  0x49   : > { %p1628_p11 = pneg %p1627_p10 }
  0x4b   : > { %p1633_p2 = pnand %p1632_p0, %p1628_p11 }
  0x4d   : > { %1636 = shalt.err (!%p1633_p2)
}
  0x4e   : > { %1451 = dma.hbm_to_vmem [thread:$0]  (!%p1911_p7), %s520_s8, 128, %s522_s24, %s510_s16  }
  0x4f   : > { %530 = sbr.rel (%p1854_p3) target bundleno = 2247 (0x8c7), region = 84  ;;  %s1947_s11 = sand.u32 (!%p1854_p3), 1, %s1722_s22  }
  0x50   : > { %s1950_s13 = sshll.u32 (!%p1854_p3), %s1947_s11, 3  ;;  %s533_s15 = scalar_lea.sflag (!%p1854_p3), [#allocation3], %s1947_s11 }
  0x51   : > { %s536_s14 = scalar_lea.vmem (!%p1854_p3), [#allocation2], %s1950_s13 }
  0x54   : > { %1697 = dma.done.wait (%p1887_p12), %s533_s15, 128  }
  0x55   : > { %1699 = vsyncadd (%p1887_p12), %s533_s15, 4294967168  ;;  %s542_s23 = sand.u32 1, %s1849_s28   ;;  %s546_s29 = scalar_lea.vmem [#allocation5], %s1950_s13 }
  0x56   : > { %s543_s24 = scalar_lea.sflag [#allocation6], %s542_s23 }
  0x57   : > { %1701 = dma.done.wait (%p1887_p12), %s543_s24, 128  }
  0x58   : > { %1703 = vsyncadd (%p1887_p12), %s543_s24, 4294967168 }
  0x59   : > { %1705 = dma.done.wait (%p57_p1), [#allocation6], 512  }
  0x5a   : > { %1707 = vsyncadd (%p57_p1), [#allocation6], 4294966784 }
  0x5b   : > { %1709 = dma.done.wait (%p57_p1), [#allocation9], 512  }
  0x5c   : > { %1711 = vsyncadd (%p57_p1), [#allocation9], 4294966784  ;;  %v648_v0 = vld [vmem:[%s2178_s4 + $0x18] sm:$0xff]  ;;  %v647_v1 = vld [vmem:[%s2178_s4 + $0x10] sm:$0xff]  ;;  %vm621_vm0 = vcmask 261120   ;;  %vm701_vm1 = vcmask 64512  }
  0x5d   : > { %v616_v2 = vld [vmem:[%s2176_s2 + $0x18] sm:$0xff]  ;;  %665 = vmatpush.msra.mxu1 %v648_v0  ;;  %v615_v3 = vld [vmem:[%s2176_s2 + $0x10] sm:$0xff]  ;;  %v646_v4 = vld [vmem:[%s2178_s4 + $0x8] sm:$0xff]  ;;  %s1736_s8 = smov 112   ;;  %s1737_s27 = smov 120  }
  0x5e   : > { %637 = vmatpush.msra.mxu0 %v616_v2  ;;  %v645_v5 = vld [vmem:[%s2178_s4] sm:$0xff]  ;;  %v614_v6 = vld [vmem:[%s2176_s2 + $0x8] sm:$0xff]  ;;  %s1738_s25 = smov 104   ;;  %v2020_v18 = vld [vmem:[%s546_s29] sm:$0xff]  ;;  %s2227_s12 = sld [smem:[#allocation29_spill]] }
  0x5f   : > { %666 = vmatpush.msra.mxu1 %v647_v1  ;;  %v1993_v7 = vld [vmem:[%s536_s14] sm:$0xff]  ;;  %vm729_vm2 = vcmp.ne.s32.totalorder %v2020_v18, 0  ;;  %v676_v23 = vld [vmem:[%s2180_s6 + $0x18] sm:$0xff]  ;;  %v675_v24 = vld [vmem:[%s2180_s6 + $0x10] sm:$0xff]  ;;  %s2228_s10 = sld [smem:[#allocation25_spill]]  ;;  %s1421_s0 = sshll.u32 %s1849_s28, 3 }
  0x60   : > { %638 = vmatpush.msra.mxu0 %v615_v3  ;;  %v613_v8 = vld [vmem:[%s2176_s2] sm:$0xff]  ;;  %693 = vmatpush.msra.mxu2 %v676_v23  ;;  %v674_v25 = vld [vmem:[%s2180_s6 + $0x8] sm:$0xff]  ;;  %s2229_s24 = sld [smem:[#allocation26_spill]]  ;;  %s610_s14 = scalar_lea.vmem [#allocation10], %s1950_s13 }
  0x61   : > { %667 = vmatpush.msra.mxu1 %v646_v4  ;;  %v1502_v9 = vld [vmem:[%s2179_s5] ss:$0 sm:$0xff]  ;;  %s2230_s26 = sld [smem:[#allocation28_spill]]  ;;  %s1257_s28 = scalar_lea.sflag [#allocation4], %s1947_s11 }
  0x62   : > { %639 = vmatpush.msra.mxu0 %v614_v6  ;;  %v1503_v10 = vld [vmem:[%s2177_s3] ss:$0 sm:$0xff]  ;;  %694 = vmatpush.msra.mxu2 %v675_v24  ;;  %s2231_s18 = sld [smem:[#allocation30_spill]] }
  0x63   : > { %668 = vmatpush.msra.mxu1 %v645_v5  ;;  %v673_v26 = vld [vmem:[%s2180_s6] sm:$0xff]  ;;  %s2232_s23 = sld [smem:[#allocation31_spill]] }
  0x64   : > { %640 = vmatpush.msra.mxu0 %v613_v8  ;;  %1400 = vmatmul.msk.f32.vlgmr.msra.gmra.mxu1 %vm621_vm0, %v1993_v7  ;;  %v1504_v36 = vld [vmem:[%s2181_s7] ss:$0 sm:$0xff] }
  0x65   : > { %1399 = vmatmul.msk.f32.vlgmr.msra.gmra.mxu0 %vm621_vm0, %v1993_v7  ;;  %695 = vmatpush.msra.mxu2 %v674_v25  ;;  %v778_v40 = vld [vmem:[#allocation7] sm:$0xff] }
  0x67   : > { %696 = vmatpush.msra.mxu2 %v673_v26 }
  0x68   : > { %1401 = vmatmul.msk.f32.vlgmr.msra.gmra.mxu2 %vm621_vm0, %v1993_v7 }
  0x69   : > { %s2233_s19 = smov %s2232_s23 }
  0x6a   : > { %s1672_s13 = scalar_lea.hbm %s2233_s19, 16 }
  0xe1   : > { %v670_v11 = vpop.f32.mrf.mxu1 }
  0xe2   : > { %v642_v12 = vpop.f32.mrf.mxu0  ;;  %v671_v13 = vadd.f32 %v1502_v9, %v670_v11 }
  0xe3   : > { %v643_v14 = vadd.f32 %v1503_v10, %v642_v12 }
  0xe4   : > { %909 = vrot.lane.b32.xlu2 %v671_v13, %s1736_s8  ;;  %781 = vrot.lane.b32.xlu1 %v671_v13, %s1737_s27 }
  0xe5   : > { %1402 = vmatpush.xpose.msk.msrb.mxu0 %vm701_vm1, %v671_v13 }
  0xe8   : > { %1403 = vmatmul.msk.f32.vlgmr.msrb.gmra.mxu0 %vm701_vm1, %v643_v14 }
  0xeb   : > { %v698_v38 = vpop.f32.mrf.mxu2 }
  0xec   : > { %1014 = vrot.lane.b32.xlu2 %v671_v13, %s1738_s25  ;;  %779 = vrot.lane.b32.xlu1 %v643_v14, %s1737_s27  ;;  %v2048_v39 = vadd.f32 %v1504_v36, %v698_v38 }
  0xee   : > { %773 = vmatpush.msra.mxu3 %v2048_v39 }
  0xf0   : > { %902 = vmatpush.msrb.mxu3 %v778_v40 }
  0xf4   : > { %1012 = vrot.lane.b32.xlu1 %v643_v14, %s1738_s25 }
 0x13e   : > { %v910_v16 = vpop.permute.xlu2 %909 }
 0x146   : > { %v1015_v37 = vpop.permute.xlu2 %1014 }
 0x156   : > { %v782_v15 = vpop.permute.xlu1 %781 }
 0x157   : > { %1405 = vmatpush.xpose.msk.msra.mxu0 %vm701_vm1, %v782_v15 }
 0x15b   : > { %1410 = vmatpush.xpose.msk.msrb.mxu0 %vm701_vm1, %v910_v16 }
 0x15e   : > { %v780_v17 = vpop.permute.xlu1 %779 }
 0x15f   : > { %1406 = vmatmul.msk.f32.vlgmr.msra.gmra.mxu0 %vm701_vm1, %v780_v17 }
 0x165   : > { %v725_v19 = vpop.f32.mrf.mxu0 }
 0x166   : > { %v728_v20 = vmul.f32 0.35355338, %v725_v19  ;;  %v1013_v0 = vpop.permute.xlu1 %1012 }
 0x168   : > { %v730_v21 = vsel %vm729_vm2, -1e+09, %v728_v20 }
 0x169   : > { %v731_v22 = vsel %vm701_vm1, %v730_v21, -inf }
 0x16a   : > { %732 = vmax.xlane.f32.xlu0 %v731_v22 }
 0x1dc   : > { %v804_v27 = vpop.f32.mrf.mxu0 }
 0x1dd   : > { %v807_v28 = vmul.f32 0.35355338, %v804_v27  ;;  %v733_v29 = vpop.xlane.xlu0 %732 }
 0x1de   : > { %v734_v30 = vsub.f32 %v730_v21, %v733_v29 }
 0x1df   : > { %v808_v31 = vsel %vm729_vm2, -1e+09, %v807_v28 }
 0x1e0   : > { %v735_v32 = vmul.f32 1.442695, %v734_v30  ;;  %v809_v33 = vsel %vm701_vm1, %v808_v31, -inf }
 0x1e1   : > { %810 = vmax.xlane.f32.xlu2 %v809_v33 }
 0x1e2   : > { %1510 = vpow2.f32 %v735_v32  ;;  %v860_v32 = vld [vmem:[#allocation7 + $0x8] sm:$0xff] }
 0x1e3   : > { %879 = vmatpush.msrb.mxu2 %v860_v32 }
 0x1e8   : > { %v1511_v34 = vpop.eup %1510 }
 0x1e9   : > { %v737_v35 = vsel %vm701_vm1, %v1511_v34, 0.0 }
 0x1ea   : > { %738 = vadd.xlane.f32.xlu0 %v737_v35 }
 0x1fe   : > { %907 = vrot.lane.b32.xlu0 %v643_v14, %s1736_s8 }
 0x254   : > { %v811_v41 = vpop.xlane.xlu2 %810 }
 0x255   : > { %v812_v42 = vsub.f32 %v808_v31, %v811_v41 }
 0x257   : > { %v813_v43 = vmul.f32 1.442695, %v812_v42 }
 0x259   : > { %1512 = vpow2.f32 %v813_v43 }
 0x25d   : > { %v739_v44 = vpop.xlane.xlu0 %738 }
 0x25e   : > { %1514 = vrcp.f32 %v739_v44  ;;  %v751_v50 = vand.u32 2147483648, %v739_v44  ;;  %v749_v52 = vand.u32 2147483647, %v739_v44  ;;  %vm745_vm4 = vweird.f32 %v739_v44 }
 0x25f   : > { %v2051_v45 = vpop.eup %1512 }
 0x260   : > { %v815_v46 = vsel %vm701_vm1, %v2051_v45, 0.0  ;;  %v752_v54 = vor.u32 1.1754944e-38, %v751_v50  ;;  %vm750_vm6 = vcmp.eq.f32.partialorder %v749_v52, 8.507059e+37 }
 0x261   : > { %816 = vadd.xlane.f32.xlu2 %v815_v46 }
 0x264   : > { %v1515_v47 = vpop.eup %1514 }
 0x265   : > { %v741_v48 = vmul.f32 %v1515_v47, %v739_v44  ;;  %vm746_vm3 = vweird.f32 %v1515_v47 }
 0x266   : > { %vm747_vm5 = vmor %vm745_vm4, %vm746_vm3 }
 0x267   : > { %v742_v49 = vsub.f32 1.0, %v741_v48 }
 0x269   : > { %v743_v51 = vmul.f32 %v1515_v47, %v742_v49 }
 0x26b   : > { %v744_v53 = vadd.f32 %v1515_v47, %v743_v51 }
 0x26d   : > { %v748_v55 = vsel %vm747_vm5, %v1515_v47, %v744_v53 }
 0x26e   : > { %v753_v56 = vsel %vm750_vm6, %v752_v54, %v748_v55 }
 0x26f   : > { %v754_v57 = vmul.f32 %v1511_v34, %v753_v56 }
 0x270   : > { %v908_v58 = vpop.permute.xlu0 %907 }
 0x271   : > { %1404 = vmatmul.msk.f32.vlgmr.msra.gmra.mxu3 %vm701_vm1, %v754_v57  ;;  %1411 = vmatmul.msk.f32.vlgmr.msrb.gmra.mxu0 %vm701_vm1, %v908_v58  ;;  %v1092_v58 = vld [vmem:[#allocation7 + $0x18] sm:$0xff] }
 0x272   : > { %1414 = vmatpush.xpose.msk.msra.mxu3 %vm701_vm1, %v1015_v37 }
 0x2d4   : > { %v817_v12 = vpop.xlane.xlu2 %816 }
 0x2d5   : > { %v829_v19 = vand.u32 2147483648, %v817_v12  ;;  %vm823_vm8 = vweird.f32 %v817_v12  ;;  %v827_v18 = vand.u32 2147483647, %v817_v12 }
 0x2d7   : > { %v830_v22 = vor.u32 1.1754944e-38, %v829_v19  ;;  %vm828_vm10 = vcmp.eq.f32.partialorder %v827_v18, 8.507059e+37 }
 0x2ee   : > { %v932_v59 = vpop.f32.mrf.mxu0 }
 0x2ef   : > { %v935_v60 = vmul.f32 0.35355338, %v932_v59  ;;  %v987_v59 = vld [vmem:[#allocation7 + $0x10] sm:$0xff] }
 0x2f0   : > { %1006 = vmatpush.msra.mxu2 %v987_v59 }
 0x2f1   : > { %v936_v61 = vsel %vm729_vm2, -1e+09, %v935_v60 }
 0x2f2   : > { %v937_v62 = vsel %vm701_vm1, %v936_v61, -inf }
 0x2f3   : > { %938 = vmax.xlane.f32.xlu1 %v937_v62 }
 0x2f4   : > { %v775_v63 = vpop.f32.mrf.mxu3 }
 0x2f5   : > { %1409 = vmatmul.msk.f32.vlgmr.msrb.gmra.mxu3 %vm701_vm1, %v775_v63 }
 0x2fd   : > { %1415 = vmatmul.msk.f32.vlgmr.msra.gmra.mxu3 %vm701_vm1, %v1013_v0 }
 0x366   : > { %v939_v1 = vpop.xlane.xlu1 %938 }
 0x367   : > { %v940_v2 = vsub.f32 %v936_v61, %v939_v1 }
 0x369   : > { %v941_v3 = vmul.f32 1.442695, %v940_v2  ;;  %v1505_v2 = vld [vmem:[%s2183_s9] ss:$0 sm:$0xff] }
 0x36b   : > { %1516 = vpow2.f32 %v941_v3 }
 0x36c   : > { %1518 = vrcp.f32 %v817_v12 }
 0x371   : > { %v2063_v4 = vpop.eup %1516 }
 0x372   : > { %v943_v5 = vsel %vm701_vm1, %v2063_v4, 0.0  ;;  %v1519_v13 = vpop.eup %1518 }
 0x373   : > { %944 = vadd.xlane.f32.xlu2 %v943_v5  ;;  %v819_v14 = vmul.f32 %v1519_v13, %v817_v12  ;;  %vm824_vm7 = vweird.f32 %v1519_v13 }
 0x374   : > { %vm825_vm9 = vmor %vm823_vm8, %vm824_vm7  ;;  %vm1206_vm8 = vcmask 523264  }
 0x375   : > { %v820_v15 = vsub.f32 1.0, %v819_v14 }
 0x377   : > { %v821_v16 = vmul.f32 %v1519_v13, %v820_v15 }
 0x378   : > { %v2067_v6 = vpop.f32.mrf.mxu3 }
 0x379   : > { %v822_v17 = vadd.f32 %v1519_v13, %v821_v16 }
 0x37b   : > { %v826_v21 = vsel %vm825_vm9, %v1519_v13, %v822_v17 }
 0x37c   : > { %v831_v23 = vsel %vm828_vm10, %v830_v22, %v826_v21  ;;  %v1164_v21 = vld [vmem:[#allocation8 + $0x10] sm:$0xff]  ;;  %v1163_v22 = vld [vmem:[#allocation8 + $0x8] sm:$0xff] }
 0x37d   : > { %v832_v25 = vmul.f32 %v2051_v45, %v831_v23  ;;  %v1162_v23 = vld [vmem:[#allocation8] sm:$0xff] }
 0x380   : > { %v1037_v8 = vpop.f32.mrf.mxu3 }
 0x381   : > { %v1040_v9 = vmul.f32 0.35355338, %v1037_v8 }
 0x383   : > { %v1041_v10 = vsel %vm729_vm2, -1e+09, %v1040_v9 }
 0x384   : > { %v1042_v11 = vsel %vm701_vm1, %v1041_v10, -inf }
 0x385   : > { %1043 = vmax.xlane.f32.xlu0 %v1042_v11 }
 0x38b   : > { %834 = vrot.lane.b32.xlu2 %v2048_v39, %s1737_s27 }
 0x399   : > { %1066 = vrot.lane.b32.xlu0 %v2048_v39, %s1738_s25 }
 0x3e6   : > { %v945_v20 = vpop.xlane.xlu2 %944 }
 0x3e7   : > { %v957_v47 = vand.u32 2147483648, %v945_v20  ;;  %vm951_vm15 = vweird.f32 %v945_v20  ;;  %v955_v49 = vand.u32 2147483647, %v945_v20 }
 0x3e9   : > { %v958_v54 = vor.u32 1.1754944e-38, %v957_v47  ;;  %vm956_vm4 = vcmp.eq.f32.partialorder %v955_v49, 8.507059e+37  ;;  %v1508_v47 = vld [vmem:[%s2230_s26] ss:$0 sm:$0xff] }
 0x3ee   : > { %v835_v24 = vpop.permute.xlu2 %834 }
 0x3ef   : > { %855 = vmatpush.msrb.mxu1 %v835_v24  ;;  %v1201_v24 = vld [vmem:[%s2227_s12 + $0x38] sm:$0xff] }
 0x3f0   : > { %1407 = vmatmul.msk.f32.vlgmr.msrb.gmra.mxu1 %vm701_vm1, %v832_v25  ;;  %v1200_v25 = vld [vmem:[%s2227_s12 + $0x30] sm:$0xff]  ;;  %1218 = vmatpush.msrb.mxu3 %v1201_v24 }
 0x3f2   : > { %1219 = vmatpush.msrb.mxu3 %v1200_v25 }
 0x3f8   : > { %v1044_v26 = vpop.xlane.xlu0 %1043 }
 0x3f9   : > { %v1045_v27 = vsub.f32 %v1041_v10, %v1044_v26  ;;  %v1739_v10 = vmov 32.0   ;;  %v1199_v26 = vld [vmem:[%s2227_s12 + $0x28] sm:$0xff] }
 0x3fa   : > { %1220 = vmatpush.msrb.mxu3 %v1199_v26 }
 0x3fb   : > { %v1046_v28 = vmul.f32 1.442695, %v1045_v27 }
 0x3fd   : > { %1520 = vpow2.f32 %v1046_v28 }
 0x3fe   : > { %1522 = vrcp.f32 %v945_v20 }
 0x403   : > { %v1521_v29 = vpop.eup %1520 }
 0x404   : > { %v1048_v30 = vsel %vm701_vm1, %v1521_v29, 0.0  ;;  %v1523_v34 = vpop.eup %1522 }
 0x405   : > { %1049 = vadd.xlane.f32.xlu1 %v1048_v30  ;;  %v947_v36 = vmul.f32 %v1523_v34, %v945_v20  ;;  %vm952_vm12 = vweird.f32 %v1523_v34  ;;  %v1165_v20 = vld [vmem:[#allocation8 + $0x18] sm:$0xff] }
 0x406   : > { %vm953_vm3 = vmor %vm951_vm15, %vm952_vm12 }
 0x407   : > { %v948_v37 = vsub.f32 1.0, %v947_v36 }
 0x409   : > { %v949_v41 = vmul.f32 %v1523_v34, %v948_v37 }
 0x40b   : > { %v1067_v31 = vpop.permute.xlu0 %1066 }
 0x40c   : > { %1087 = vmatpush.msra.mxu0 %v1067_v31  ;;  %v1197_v31 = vld [vmem:[%s2227_s12 + $0x18] sm:$0xff] }
 0x41e   : > { %961 = vrot.lane.b32.xlu1 %v2048_v39, %s1736_s8  ;;  %v950_v39 = vadd.f32 %v1523_v34, %v949_v41  ;;  %s1269_s8 = sshll.u32 %s610_s14, 4  ;;  %s1270_s8 = int_to_ptr.vmem [resolvable:$true] %s1269_s8 }
 0x420   : > { %v954_v52 = vsel %vm953_vm3, %v1523_v34, %v950_v39  ;;  %v1195_v39 = vld [vmem:[%s2227_s12 + $0x8] sm:$0xff] }
 0x421   : > { %v959_v55 = vsel %vm956_vm4, %v958_v54, %v954_v52 }
 0x422   : > { %v960_v57 = vmul.f32 %v2063_v4, %v959_v55 }
 0x46d   : > { %v857_v33 = vpop.f32.mrf.mxu1 }
 0x46e   : > { %1408 = vmatmul.msk.f32.vlgmr.msrb.gmra.mxu2 %vm701_vm1, %v857_v33 }
 0x46f   : > { %1185 = vmatpush.msrb.mxu2 %v1165_v20 }
 0x471   : > { %1186 = vmatpush.msrb.mxu2 %v1164_v21 }
 0x473   : > { %1187 = vmatpush.msrb.mxu2 %v1163_v22 }
 0x475   : > { %1188 = vmatpush.msrb.mxu2 %v1162_v23 }
 0x478   : > { %v1050_v35 = vpop.xlane.xlu1 %1049 }
 0x479   : > { %1524 = vrcp.f32 %v1050_v35  ;;  %v1062_v43 = vand.u32 2147483648, %v1050_v35  ;;  %v1060_v45 = vand.u32 2147483647, %v1050_v35  ;;  %vm1056_vm13 = vweird.f32 %v1050_v35 }
 0x47a   : > { %1526 = vrcp.f32 %v1739_v10 }
 0x47b   : > { %v1063_v48 = vor.u32 1.1754944e-38, %v1062_v43  ;;  %vm1061_vm2 = vcmp.eq.f32.partialorder %v1060_v45, 8.507059e+37  ;;  %v1196_v45 = vld [vmem:[%s2227_s12 + $0x10] sm:$0xff] }
 0x47f   : > { %v1525_v38 = vpop.eup %1524 }
 0x480   : > { %v1052_v40 = vmul.f32 %v1525_v38, %v1050_v35  ;;  %vm1057_vm11 = vweird.f32 %v1525_v38  ;;  %v1527_v11 = vpop.eup %1526 }
 0x481   : > { %vm1058_vm14 = vmor %vm1056_vm13, %vm1057_vm11  ;;  %v1129_v12 = vmul.f32 32.0, %v1527_v11 }
 0x482   : > { %v1053_v42 = vsub.f32 1.0, %v1052_v40 }
 0x483   : > { %v1130_v13 = vsub.f32 1.0, %v1129_v12 }
 0x484   : > { %v1054_v44 = vmul.f32 %v1525_v38, %v1053_v42  ;;  %v1507_v42 = vld [vmem:[%s2229_s24] ss:$0 sm:$0xff]  ;;  %s1267_s24 = scalar_lea.hbm %s2232_s23, %s1421_s0 }
 0x485   : > { %s1271_s27 = sshll.u32 %s1267_s24, 4  ;;  %s1272_s27 = int_to_ptr.hbm [resolvable:$true] %s1271_s27 }
 0x486   : > { %v1055_v46 = vadd.f32 %v1525_v38, %v1054_v44  ;;  %s1666_s25 = sshra.s32 %s1272_s27, 4  ;;  %s1667_s25 = int_to_ptr.hbm [resolvable:$true] %s1666_s25 }
 0x487   : > { %s1668_s16 = scalar_lea.hbm %s1667_s25, 8  ;;  %p1673_p7 = scmp.lt.s32.totalorder %s1667_s25, %s2233_s19 }
 0x488   : > { %v1059_v50 = vsel %vm1058_vm14, %v1525_v38, %v1055_v46  ;;  %v1506_v38 = vld [vmem:[%s2228_s10] ss:$0 sm:$0xff]  ;;  %p1669_p1 = scmp.ne.s32.totalorder %s1667_s25, %s1668_s16  ;;  %p1674_p9 = scmp.lt.s32.totalorder %s1672_s13, %s1668_s16 }
 0x489   : > { %v1064_v51 = vsel %vm1061_vm2, %v1063_v48, %v1059_v50  ;;  %v1194_v46 = vld [vmem:[%s2227_s12] sm:$0xff] }
 0x48a   : > { %v1065_v53 = vmul.f32 %v1521_v29, %v1064_v51  ;;  %v1198_v29 = vld [vmem:[%s2227_s12 + $0x20] sm:$0xff]  ;;  %p1670_p3 = pnand %p1669_p1, %p1894_p4  ;;  %p1675_p8 = por %p1674_p9, %p1673_p7 }
 0x48b   : > { %1221 = vmatpush.msrb.mxu3 %v1198_v29  ;;  %v1509_v51 = vld [vmem:[%s2231_s18] ss:$0 sm:$0xff] }
 0x48c   : > { %1416 = vmatmul.msk.f32.vlgmr.msra.gmra.mxu0 %vm701_vm1, %v1065_v53  ;;  %p1671_p12 = pneg %p1670_p3 }
 0x48d   : > { %1222 = vmatpush.msrb.mxu3 %v1197_v31 }
 0x48e   : > { %p1676_p10 = pnand %p1675_p8, %p1671_p12 }
 0x48f   : > { %1223 = vmatpush.msrb.mxu3 %v1196_v45 }
 0x490   : > { %v962_v56 = vpop.permute.xlu1 %961 }
 0x491   : > { %982 = vmatpush.msra.mxu1 %v962_v56  ;;  %1224 = vmatpush.msrb.mxu3 %v1195_v39 }
 0x492   : > { %1412 = vmatmul.msk.f32.vlgmr.msra.gmra.mxu1 %vm701_vm1, %v960_v57 }
 0x493   : > { %1111 = vmatpush.msrb.mxu1 %v1092_v58  ;;  %1225 = vmatpush.msrb.mxu3 %v1194_v46 }
 0x4f1   : > { %v881_v62 = vpop.f32.mrf.mxu2 }
 0x4f2   : > { %v905_v63 = vadd.f32 %v2067_v6, %v881_v62  ;;  %v1131_v6 = vmul.f32 %v1527_v11, %v1130_v13 }
 0x4f4   : > { %v1132_v14 = vadd.f32 %v1527_v11, %v1131_v6 }
 0x509   : > { %v1089_v60 = vpop.f32.mrf.mxu0 }
 0x50a   : > { %1417 = vmatmul.msk.f32.vlgmr.msrb.gmra.mxu1 %vm701_vm1, %v1089_v60 }
 0x50f   : > { %v984_v61 = vpop.f32.mrf.mxu1 }
 0x510   : > { %1413 = vmatmul.msk.f32.vlgmr.msra.gmra.mxu2 %vm701_vm1, %v984_v61  ;;  %vm1133_vm1 = vweird.f32 %v1527_v11 }
 0x511   : > { %v2093_v15 = vsel %vm1133_vm1, %v1527_v11, %v1132_v14 }
 0x587   : > { %v1113_v3 = vpop.f32.mrf.mxu1 }
 0x593   : > { %v1008_v0 = vpop.f32.mrf.mxu2 }
 0x594   : > { %v1011_v1 = vadd.f32 %v1008_v0, %v905_v63 }
 0x596   : > { %v1116_v4 = vadd.f32 %v1113_v3, %v1011_v1 }
 0x598   : > { %v1121_v5 = vadd.f32 %v1505_v2, %v1116_v4 }
 0x59a   : > { %v1122_v8 = vadd.f32 %v1121_v5, %v1993_v7 }
 0x59c   : > { %v1125_v9 = vsel %vm621_vm0, %v1122_v8, 0.0 }
 0x59d   : > { %1126 = vadd.xlane.f32.xlu2 %v1125_v9 }
 0x610   : > { %v1127_v16 = vpop.xlane.xlu2 %1126 }
 0x611   : > { %v1135_v17 = vmul.f32 %v2093_v15, %v1127_v16 }
 0x613   : > { %v1136_v19 = vsub.f32 %v1122_v8, %v1135_v17 }
 0x615   : > { %v1137_v18 = vmul.f32 %v1136_v19, %v1136_v19 }
 0x617   : > { %v1138_v7 = vsel %vm621_vm0, %v1137_v18, 0.0 }
 0x618   : > { %1139 = vadd.xlane.f32.xlu0 %v1138_v7 }
 0x68b   : > { %v1140_v27 = vpop.xlane.xlu0 %1139 }
 0x68c   : > { %v1141_v28 = vmul.f32 %v1140_v27, %v2093_v15 }
 0x68e   : > { %v1142_v30 = vadd.f32 1e-05, %v1141_v28 }
 0x690   : > { %1528 = vrsqrt.f32 %v1142_v30  ;;  %vm1149_vm6 = vweird.f32 %v1142_v30 }
 0x696   : > { %v1529_v32 = vpop.eup %1528 }
 0x697   : > { %v1144_v33 = vmul.f32 %v1529_v32, %v1142_v30  ;;  %vm1150_vm5 = vweird.f32 %v1529_v32 }
 0x698   : > { %vm1151_vm7 = vmor %vm1149_vm6, %vm1150_vm5 }
 0x699   : > { %v1145_v34 = vmul.f32 %v1529_v32, %v1144_v33 }
 0x69b   : > { %v1146_v35 = vmul.f32 0.5, %v1145_v34 }
 0x69d   : > { %v1147_v36 = vsub.f32 1.5, %v1146_v35 }
 0x69f   : > { %v1148_v37 = vmul.f32 %v1529_v32, %v1147_v36 }
 0x6a1   : > { %v1152_v40 = vsel %vm1151_vm7, %v1529_v32, %v1148_v37 }
 0x6a2   : > { %v1153_v41 = vmul.f32 %v1152_v40, %v1136_v19 }
 0x6a4   : > { %v1157_v43 = vmul.f32 %v1506_v38, %v1153_v41 }
 0x6a6   : > { %v1161_v44 = vadd.f32 %v1507_v42, %v1157_v43 }
 0x6a8   : > { %1418 = vmatmul.msk.f32.vlgmr.msrb.gmra.mxu2 %vm621_vm0, %v1161_v44 }
 0x72b   : > { %v1190_v48 = vpop.f32.mrf.mxu2 }
 0x72c   : > { %v1191_v49 = vadd.f32 %v1508_v47, %v1190_v48 }
 0x72e   : > { %v1193_v50 = vmax.f32 %v1191_v49, 0.0 }
 0x730   : > { %1419 = vmatmul.msk.f32.vlgmr.msrb.gmra.mxu3 %vm1206_vm8, %v1193_v50 }
 0x7b3   : > { %v1227_v52 = vpop.f32.mrf.mxu3 }
 0x7b4   : > { %v1228_v53 = vadd.f32 %v1509_v51, %v1227_v52 }
 0x7b6   : > { %v1230_v54 = vadd.f32 %v1228_v53, %v1161_v44 }
 0x7b8   : > { %v1231_v55 = vsel %vm621_vm0, %v1230_v54, 0.0 }
 0x7b9   : > { %1232 = vadd.xlane.f32.xlu1 %v1231_v55 }
 0x82c   : > { %v1233_v56 = vpop.xlane.xlu1 %1232 }
 0x82d   : > { %v1234_v57 = vmul.f32 %v1233_v56, %v2093_v15 }
 0x82f   : > { %v1235_v58 = vsub.f32 %v1230_v54, %v1234_v57 }
 0x831   : > { %v1236_v59 = vmul.f32 %v1235_v58, %v1235_v58 }
 0x833   : > { %v1237_v60 = vsel %vm621_vm0, %v1236_v59, 0.0 }
 0x834   : > { %1238 = vadd.xlane.f32.xlu2 %v1237_v60 }
 0x8a7   : > { %v1239_v61 = vpop.xlane.xlu2 %1238 }
 0x8a8   : > { %v1240_v62 = vmul.f32 %v1239_v61, %v2093_v15 }
 0x8aa   : > { %v1241_v63 = vadd.f32 1e-05, %v1240_v62 }
 0x8ac   : > { %1530 = vrsqrt.f32 %v1241_v63  ;;  %vm1248_vm10 = vweird.f32 %v1241_v63 }
 0x8b2   : > { %v1531_v0 = vpop.eup %1530 }
 0x8b3   : > { %v1243_v1 = vmul.f32 %v1531_v0, %v1241_v63  ;;  %vm1249_vm9 = vweird.f32 %v1531_v0 }
 0x8b4   : > { %vm1250_vm11 = vmor %vm1248_vm10, %vm1249_vm9 }
 0x8b5   : > { %v1244_v2 = vmul.f32 %v1531_v0, %v1243_v1 }
 0x8b7   : > { %v1245_v3 = vmul.f32 0.5, %v1244_v2 }
 0x8b9   : > { %v1246_v4 = vsub.f32 1.5, %v1245_v3 }
 0x8bb   : > { %v1247_v5 = vmul.f32 %v1531_v0, %v1246_v4 }
 0x8bd   : > { %v1251_v8 = vsel %vm1250_vm11, %v1531_v0, %v1247_v5 }
 0x8be   : > { %v1252_v9 = vmul.f32 %v1251_v8, %v1235_v58 }
 0x8c0   : > { %v1253_v10 = vmul.f32 %v1506_v38, %v1252_v9 }
 0x8c2   : > { %v1254_v11 = vadd.f32 %v1507_v42, %v1253_v10 }
 0x8c4   : > { %1255 = vst.msk [vmem:[%s610_s14] sm:$0xff] %vm621_vm0, %v1254_v11 }
 0x8c5   : > { %1679 = shalt.err (!%p1676_p10)
}
 0x8c6   : > { %1436 = dma.vmem_to_hbm [thread:$0]  (%p1894_p4), %s1270_s8, 128, %s1272_s27, %s1257_s28  }
 0x8c7 PF: > { %s2235_s11 = sld [smem:[#allocation16_spill]] }
 0x8c8   : > { %s2237_s0 = sld [smem:[#allocation18_spill]] }
 0x8cd   : > { %s1283_s10 = sand.u32 1, %s2235_s11  }
 0x8ce   : > { %p2238_p11 = scmp.ge.s32.totalorder %s2237_s0, 2  ;;  %s1284_s15 = scalar_lea.sflag [#allocation4], %s1283_s10 }
 0x8d0   : > { %p1453_p5 = pnand %p2238_p11, %p1898_p6 }
 0x8d2   : > { %p1454_p13 = pneg %p1453_p5 }
 0x8d4   : > { %1713 = dma.done.wait (%p1454_p13), %s1284_s15, 128  }
 0x8d5   : > { %1715 = vsyncadd (%p1454_p13), %s1284_s15, 4294967168  ;;  %s2239_s24 = sld [smem:[#allocation19_spill]]  ;;  %s2242_s21 = smov %s1722_s22 }
 0x8d6   : > { %s2240_s23 = sld [smem:[#allocation17_spill]] }
 0x8d7   : > { %s2241_s14 = sld [smem:[#allocation20_spill]] }
 0x8db   : > { %p33_p0 = scmp.ge.s32.totalorder %s2239_s24, 4  }
 0x8dc   : > { %s2243_s22 = smov %s2240_s23 }
 0x8dd   : > { %s2244_s23 = smov %s2241_s14  ;;  %35 = sbr.rel (!%p33_p0) target bundleno = 18 (0x12), region = 150 }
 0x8e2   :  { %1290 = vsyncpa [#allocation3], 1 }
 0x8e3   :  { %1292 = vsyncpa [#allocation3 + $0x1], 1 }
 0x8e4   :  { %1293 = vsyncpa [#allocation6], 1 }
 0x8e5   :  { %1295 = vsyncpa [#allocation6 + $0x1], 1 }
 0x8e6   :  { %1296 = vsyncpa [#allocation9], 1 }
 0x8e7   :  { %1297 = vsyncpa [#allocation4], 1 }
 0x8e8   :  { %1299 = vsyncpa [#allocation4 + $0x1], 1 }

</bundles_post_ra>
